<compile_context>
chip_gen: v6e
topology: v6e:2x2x1
jax: 0.10.0
libtpu: 0.0.40
codegen_flags: <defaults>
</compile_context>

<pallas_src>
import functools

import jax
import jax.numpy as jnp
from jax import lax
from jax.experimental import pallas as pl
from jax.experimental.pallas import tpu as pltpu


def _round_up(x, m):
    return ((x + m - 1) // m) * m


# ---------------------------------------------------------------------------
# Pallas kernel: tap-decomposed conv GEMM, fused bias + leaky_relu epilogue
# ---------------------------------------------------------------------------
def _downscale_kernel(xf_ref, w_ref, b_ref, o_ref, *, KH, KW, Wh, L_gemm):
    # xf_ref : (1, 4, tc, L_flat)  parity-split / row-flattened / zero-padded input
    # w_ref  : (KH*KW, OC, tc)     per-tap weight slabs (tap t = kh*KW + kw)
    # b_ref  : (OC, 1)             bias column (f32)
    # o_ref  : (1, OC, L_gemm)     f32 output block, resident across the c axis
    c_idx = pl.program_id(1)

    @pl.when(c_idx == 0)
    def _():
        o_ref[...] = jnp.zeros_like(o_ref)

    # In-kernel "im2col": every tap is a contiguous lane slice of the flattened
    # parity image (start = (kh//2)*Wh + kw//2), reused from VMEM for all taps.
    acc = None
    for kh in range(KH):
        for kw in range(KW):
            t = kh * KW + kw
            ph, rh = kh % 2, kh // 2
            pw, rw = kw % 2, kw // 2
            q = ph * 2 + pw
            start = rh * Wh + rw                                  # static per tap
            xs = xf_ref[0, q, :, pl.ds(start, L_gemm)]            # (tc, L_gemm)
            d = jnp.dot(w_ref[t], xs, preferred_element_type=jnp.float32)
            acc = d if acc is None else acc + d

    o_ref[...] += acc[None]                                       # accumulate in-place

    @pl.when(c_idx == pl.num_programs(1) - 1)
    def _():
        y = o_ref[...] + b_ref[...]                                # bias (broadcast over lanes)
        o_ref[...] = jnp.where(y >= 0, y, 0.1 * y)                 # leaky_relu(0.1)


# ---------------------------------------------------------------------------
# Downscale module (thin JAX glue around the Pallas kernel)
# ---------------------------------------------------------------------------
class Downscale:
    def __init__(self, in_ch, out_ch, kernel_size=5, *, key=None,
                 compute_dtype=jnp.bfloat16):
        self.in_ch = in_ch
        self.out_ch = out_ch
        self.kernel_size = kernel_size
        self.compute_dtype = compute_dtype
        if key is None:
            key = jax.random.PRNGKey(0)
        kw_key, kb_key = jax.random.split(key)
        fan_in = in_ch * kernel_size * kernel_size
        bound = 1.0 / (fan_in ** 0.5)
        self.weight = jax.random.uniform(
            kw_key, (out_ch, in_ch, kernel_size, kernel_size),
            dtype=jnp.float32, minval=-bound, maxval=bound)
        self.bias = jax.random.uniform(
            kb_key, (out_ch,), dtype=jnp.float32, minval=-bound, maxval=bound)

    def get_out_ch(self):
        return self.out_ch

    def __call__(self, x):
        # x: (N, C, H, W) NCHW, same as PyTorch
        N, C, H, W = x.shape
        K = self.kernel_size
        stride, pad = 2, 2
        Ho = (H + 2 * pad - K) // stride + 1
        Wo = (W + 2 * pad - K) // stride + 1
        OC = self.out_ch

        # ---- space-to-depth (parity split) of the zero-padded input ----
        # xq[n, ph*2+pw, c, hh*Wh+wh] = x_padded[n, c, 2*hh+ph, 2*wh+pw]
        # This is the ONLY wrapper-side data movement (~1x bytes of x).
        Hp = H + 2 * pad + (H % 2)                     # even
        Wp = W + 2 * pad + (W % 2)                     # even
        Hh, Wh = Hp // 2, Wp // 2
        xp = jnp.pad(x, ((0, 0), (0, 0),
                         (pad, Hp - H - pad), (pad, Wp - W - pad)))
        xq = xp.reshape(N, C, Hh, 2, Wh, 2)
        xq = jnp.transpose(xq, (0, 3, 5, 1, 2, 4)).reshape(N, 4, C, Hh * Wh)

        # ---- tiling / padding (lane-dense GEMM M, v7x-safe VMEM budget) ----
        r_max = (K - 1) // 2                            # max element shift per tap
        L_gemm = _round_up(Ho * Wh, 128)                # per-step M (multiple of 128 lanes)
        L_flat = _round_up(max(Hh * Wh, r_max * Wh + r_max + L_gemm), 128)
        if C <= 256:
            tc, C_pad = C, C                            # whole-C resident, single reduce step
        else:
            tc = 128                                    # channel-tiled reduction
            C_pad = _round_up(C, tc)
        n_ct = C_pad // tc

        cdt = self.compute_dtype
        xq = jnp.pad(xq, ((0, 0), (0, 0), (0, C_pad - C),
                          (0, L_flat - Hh * Wh))).astype(cdt)
        w = jnp.transpose(self.weight, (2, 3, 0, 1)).reshape(K * K, OC, C)
        w = jnp.pad(w, ((0, 0), (0, 0), (0, C_pad - C))).astype(cdt)
        b = self.bias.reshape(OC, 1).astype(jnp.float32)

        kernel = functools.partial(_downscale_kernel,
                                   KH=K, KW=K, Wh=Wh, L_gemm=L_gemm)

        out = pl.pallas_call(
            kernel,
            out_shape=jax.ShapeDtypeStruct((N, OC, L_gemm), jnp.float32),
            grid_spec=pltpu.PrefetchScalarGridSpec(
                num_scalar_prefetch=0,
                grid=(N, n_ct),                          # batch (parallel) x channel-reduce
                in_specs=[
                    pl.BlockSpec((1, 4, tc, L_flat), lambda n, c: (n, 0, c, 0)),
                    pl.BlockSpec((K * K, OC, tc),    lambda n, c: (0, 0, c)),
                    pl.BlockSpec((OC, 1),            lambda n, c: (0, 0)),
                ],
                out_specs=pl.BlockSpec((1, OC, L_gemm), lambda n, c: (n, 0, 0)),
            ),
            compiler_params=pltpu.CompilerParams(
                dimension_semantics=("parallel", "arbitrary"),
                vmem_limit_bytes=48 * 1024 * 1024,
            ),
        )(xq, w, b)

        # Valid GEMM columns are j = ho*Wh + wo with wo < Wo -> NCHW, no transpose.
        y = out[:, :, :Ho * Wh].reshape(N, OC, Ho, Wh)[:, :, :, :Wo]
        return y


# ---------------------------------------------------------------------------
# Pure-JAX reference (for correctness check)
# ---------------------------------------------------------------------------
def _reference(x, weight, bias):
    y = lax.conv_general_dilated(
        x, weight, window_strides=(2, 2), padding=((2, 2), (2, 2)),
        dimension_numbers=("NCHW", "OIHW", "NCHW"),
        precision=lax.Precision.HIGHEST)
    y = y + bias.reshape(1, -1, 1, 1)
    return jnp.where(y >= 0, y, 0.1 * y)


if __name__ == "__main__":
    key = jax.random.PRNGKey(0)
    k_x, k_p = jax.random.split(key)

    # small shapes consistent with the module: batch=2, in_ch=4, H=W=16
    x = jax.random.normal(k_x, (2, 4, 16, 16), dtype=jnp.float32)
    mod = Downscale(in_ch=4, out_ch=8, kernel_size=5, key=k_p)

    fwd = jax.jit(lambda t: mod(t))
    out = jax.block_until_ready(fwd(x))
    assert out.shape == (2, 8, 8, 8), out.shape

    # Reference on bf16-rounded inputs (same rounding as the kernel's bf16 streams,
    # f32 accumulation) -> only accumulation-order differences remain.
    xb = x.astype(jnp.bfloat16).astype(jnp.float32)
    wb = mod.weight.astype(jnp.bfloat16).astype(jnp.float32)
    ref_b = jax.block_until_ready(_reference(xb, wb, mod.bias))
    assert jnp.allclose(out, ref_b, atol=1e-3, rtol=1e-3), "mismatch vs bf16-rounded ref"

    # Loose sanity check against the full-f32 reference (bf16 input rounding only).
    ref_f = jax.block_until_ready(_reference(x, mod.weight, mod.bias))
    assert jnp.allclose(out, ref_f, atol=5e-2, rtol=5e-2), "mismatch vs f32 ref"

    print("KERNEL_OK")
</pallas_src>

<mosaic_0001>
module attributes {stable_mosaic.version = 11 : i64} {
  func.func @_downscale_kernel(%arg0: i32, %arg1: i32, %arg2: memref<1x4x4x256xbf16, #tpu.memory_space<vmem>>, %arg3: memref<25x8x4xbf16, #tpu.memory_space<vmem>>, %arg4: memref<8x1xf32, #tpu.memory_space<vmem>>, %arg5: memref<1x8x128xf32, #tpu.memory_space<vmem>>) attributes {dimension_semantics = [#tpu.dimension_semantics<parallel>, #tpu.dimension_semantics<arbitrary>], iteration_bounds = array<i64: 2, 1>, scalar_prefetch = 0 : i64, scratch_operands = 0 : i64, tpu.core_type = #tpu.core_type<tc>, window_params = [{transform_indices = @transform_0, window_bounds = array<i64: 1, 4, 4, 256>}, {transform_indices = @transform_1, window_bounds = array<i64: 25, 8, 4>}, {pipeline_mode = #tpu.pipeline_mode<synchronous>, transform_indices = @transform_2, window_bounds = array<i64: 8, 1>}, {transform_indices = @transform_3, window_bounds = array<i64: 1, 8, 128>}]} {
    %c0_i32 = arith.constant 0 : i32
    %0 = arith.cmpi eq, %arg1, %c0_i32 : i32
    %1 = arith.extui %0 : i1 to i32
    %c0_i32_0 = arith.constant 0 : i32
    %2 = arith.cmpi ne, %1, %c0_i32_0 : i32
    scf.if %2 {
      %cst_183 = arith.constant 0.000000e+00 : f32
      %159 = vector.broadcast %cst_183 : f32 to vector<1x8x128xf32>
      %c0_184 = arith.constant 0 : index
      %c0_185 = arith.constant 0 : index
      %c0_186 = arith.constant 0 : index
      %160 = vector.load %arg5[%c0_184, %c0_185, %c0_186] : memref<1x8x128xf32, #tpu.memory_space<vmem>>, vector<1x8x128xf32>
      tpu.vector_store %arg5[%c0_184, %c0_185, %c0_186], %159 {strides = array<i32>} : memref<1x8x128xf32, #tpu.memory_space<vmem>>, vector<1x8x128xf32>,
    } else {
    }
    %c0 = arith.constant 0 : index
    %c0_1 = arith.constant 0 : index
    %c0_2 = arith.constant 0 : index
    %c0_3 = arith.constant 0 : index
    %3 = vector.load %arg2[%c0, %c0_1, %c0_2, %c0_3] : memref<1x4x4x256xbf16, #tpu.memory_space<vmem>>, vector<1x1x4x128xbf16>
    %4 = vector.shape_cast %3 : vector<1x1x4x128xbf16> to vector<4x128xbf16>
    %c0_4 = arith.constant 0 : index
    %c0_5 = arith.constant 0 : index
    %c0_6 = arith.constant 0 : index
    %5 = vector.load %arg3[%c0_4, %c0_5, %c0_6] : memref<25x8x4xbf16, #tpu.memory_space<vmem>>, vector<1x8x4xbf16>
    %6 = vector.shape_cast %5 : vector<1x8x4xbf16> to vector<8x4xbf16>
    %cst = arith.constant dense<0.000000e+00> : vector<8x128xf32>
    %7 = tpu.matmul %6, %4, %cst {dimension_numbers = #tpu.dot_dimension_numbers<[1], [0], [0], [1], [0, 0, 1, 1], [], []>} : vector<8x4xbf16>, vector<4x128xbf16>, vector<8x128xf32> -> vector<8x128xf32>
    %c0_7 = arith.constant 0 : index
    %c1 = arith.constant 1 : index
    %c0_8 = arith.constant 0 : index
    %c0_9 = arith.constant 0 : index
    %8 = vector.load %arg2[%c0_7, %c1, %c0_8, %c0_9] : memref<1x4x4x256xbf16, #tpu.memory_space<vmem>>, vector<1x1x4x128xbf16>
    %9 = vector.shape_cast %8 : vector<1x1x4x128xbf16> to vector<4x128xbf16>
    %c1_10 = arith.constant 1 : index
    %c0_11 = arith.constant 0 : index
    %c0_12 = arith.constant 0 : index
    %10 = vector.load %arg3[%c1_10, %c0_11, %c0_12] : memref<25x8x4xbf16, #tpu.memory_space<vmem>>, vector<1x8x4xbf16>
    %11 = vector.shape_cast %10 : vector<1x8x4xbf16> to vector<8x4xbf16>
    %cst_13 = arith.constant dense<0.000000e+00> : vector<8x128xf32>
    %12 = tpu.matmul %11, %9, %cst_13 {dimension_numbers = #tpu.dot_dimension_numbers<[1], [0], [0], [1], [0, 0, 1, 1], [], []>} : vector<8x4xbf16>, vector<4x128xbf16>, vector<8x128xf32> -> vector<8x128xf32>
    %13 = arith.addf %7, %12 : vector<8x128xf32>
    %c0_14 = arith.constant 0 : index
    %c0_15 = arith.constant 0 : index
    %c0_16 = arith.constant 0 : index
    %c1_17 = arith.constant 1 : index
    %14 = vector.load %arg2[%c0_14, %c0_15, %c0_16, %c1_17] : memref<1x4x4x256xbf16, #tpu.memory_space<vmem>>, vector<1x1x4x128xbf16>
    %15 = vector.shape_cast %14 : vector<1x1x4x128xbf16> to vector<4x128xbf16>
    %c2 = arith.constant 2 : index
    %c0_18 = arith.constant 0 : index
    %c0_19 = arith.constant 0 : index
    %16 = vector.load %arg3[%c2, %c0_18, %c0_19] : memref<25x8x4xbf16, #tpu.memory_space<vmem>>, vector<1x8x4xbf16>
    %17 = vector.shape_cast %16 : vector<1x8x4xbf16> to vector<8x4xbf16>
    %cst_20 = arith.constant dense<0.000000e+00> : vector<8x128xf32>
    %18 = tpu.matmul %17, %15, %cst_20 {dimension_numbers = #tpu.dot_dimension_numbers<[1], [0], [0], [1], [0, 0, 1, 1], [], []>} : vector<8x4xbf16>, vector<4x128xbf16>, vector<8x128xf32> -> vector<8x128xf32>
    %19 = arith.addf %13, %18 : vector<8x128xf32>
    %c0_21 = arith.constant 0 : index
    %c1_22 = arith.constant 1 : index
    %c0_23 = arith.constant 0 : index
    %c1_24 = arith.constant 1 : index
    %20 = vector.load %arg2[%c0_21, %c1_22, %c0_23, %c1_24] : memref<1x4x4x256xbf16, #tpu.memory_space<vmem>>, vector<1x1x4x128xbf16>
    %21 = vector.shape_cast %20 : vector<1x1x4x128xbf16> to vector<4x128xbf16>
    %c3 = arith.constant 3 : index
    %c0_25 = arith.constant 0 : index
    %c0_26 = arith.constant 0 : index
    %22 = vector.load %arg3[%c3, %c0_25, %c0_26] : memref<25x8x4xbf16, #tpu.memory_space<vmem>>, vector<1x8x4xbf16>
    %23 = vector.shape_cast %22 : vector<1x8x4xbf16> to vector<8x4xbf16>
    %cst_27 = arith.constant dense<0.000000e+00> : vector<8x128xf32>
    %24 = tpu.matmul %23, %21, %cst_27 {dimension_numbers = #tpu.dot_dimension_numbers<[1], [0], [0], [1], [0, 0, 1, 1], [], []>} : vector<8x4xbf16>, vector<4x128xbf16>, vector<8x128xf32> -> vector<8x128xf32>
    %25 = arith.addf %19, %24 : vector<8x128xf32>
    %c0_28 = arith.constant 0 : index
    %c0_29 = arith.constant 0 : index
    %c0_30 = arith.constant 0 : index
    %c2_31 = arith.constant 2 : index
    %26 = vector.load %arg2[%c0_28, %c0_29, %c0_30, %c2_31] : memref<1x4x4x256xbf16, #tpu.memory_space<vmem>>, vector<1x1x4x128xbf16>
    %27 = vector.shape_cast %26 : vector<1x1x4x128xbf16> to vector<4x128xbf16>
    %c4 = arith.constant 4 : index
    %c0_32 = arith.constant 0 : index
    %c0_33 = arith.constant 0 : index
    %28 = vector.load %arg3[%c4, %c0_32, %c0_33] : memref<25x8x4xbf16, #tpu.memory_space<vmem>>, vector<1x8x4xbf16>
    %29 = vector.shape_cast %28 : vector<1x8x4xbf16> to vector<8x4xbf16>
    %cst_34 = arith.constant dense<0.000000e+00> : vector<8x128xf32>
    %30 = tpu.matmul %29, %27, %cst_34 {dimension_numbers = #tpu.dot_dimension_numbers<[1], [0], [0], [1], [0, 0, 1, 1], [], []>} : vector<8x4xbf16>, vector<4x128xbf16>, vector<8x128xf32> -> vector<8x128xf32>
    %31 = arith.addf %25, %30 : vector<8x128xf32>
    %c0_35 = arith.constant 0 : index
    %c2_36 = arith.constant 2 : index
    %c0_37 = arith.constant 0 : index
    %c0_38 = arith.constant 0 : index
    %32 = vector.load %arg2[%c0_35, %c2_36, %c0_37, %c0_38] : memref<1x4x4x256xbf16, #tpu.memory_space<vmem>>, vector<1x1x4x128xbf16>
    %33 = vector.shape_cast %32 : vector<1x1x4x128xbf16> to vector<4x128xbf16>
    %c5 = arith.constant 5 : index
    %c0_39 = arith.constant 0 : index
    %c0_40 = arith.constant 0 : index
    %34 = vector.load %arg3[%c5, %c0_39, %c0_40] : memref<25x8x4xbf16, #tpu.memory_space<vmem>>, vector<1x8x4xbf16>
    %35 = vector.shape_cast %34 : vector<1x8x4xbf16> to vector<8x4xbf16>
    %cst_41 = arith.constant dense<0.000000e+00> : vector<8x128xf32>
    %36 = tpu.matmul %35, %33, %cst_41 {dimension_numbers = #tpu.dot_dimension_numbers<[1], [0], [0], [1], [0, 0, 1, 1], [], []>} : vector<8x4xbf16>, vector<4x128xbf16>, vector<8x128xf32> -> vector<8x128xf32>
    %37 = arith.addf %31, %36 : vector<8x128xf32>
    %c0_42 = arith.constant 0 : index
    %c3_43 = arith.constant 3 : index
    %c0_44 = arith.constant 0 : index
    %c0_45 = arith.constant 0 : index
    %38 = vector.load %arg2[%c0_42, %c3_43, %c0_44, %c0_45] : memref<1x4x4x256xbf16, #tpu.memory_space<vmem>>, vector<1x1x4x128xbf16>
    %39 = vector.shape_cast %38 : vector<1x1x4x128xbf16> to vector<4x128xbf16>
    %c6 = arith.constant 6 : index
    %c0_46 = arith.constant 0 : index
    %c0_47 = arith.constant 0 : index
    %40 = vector.load %arg3[%c6, %c0_46, %c0_47] : memref<25x8x4xbf16, #tpu.memory_space<vmem>>, vector<1x8x4xbf16>
    %41 = vector.shape_cast %40 : vector<1x8x4xbf16> to vector<8x4xbf16>
    %cst_48 = arith.constant dense<0.000000e+00> : vector<8x128xf32>
    %42 = tpu.matmul %41, %39, %cst_48 {dimension_numbers = #tpu.dot_dimension_numbers<[1], [0], [0], [1], [0, 0, 1, 1], [], []>} : vector<8x4xbf16>, vector<4x128xbf16>, vector<8x128xf32> -> vector<8x128xf32>
    %43 = arith.addf %37, %42 : vector<8x128xf32>
    %c0_49 = arith.constant 0 : index
    %c2_50 = arith.constant 2 : index
    %c0_51 = arith.constant 0 : index
    %c1_52 = arith.constant 1 : index
    %44 = vector.load %arg2[%c0_49, %c2_50, %c0_51, %c1_52] : memref<1x4x4x256xbf16, #tpu.memory_space<vmem>>, vector<1x1x4x128xbf16>
    %45 = vector.shape_cast %44 : vector<1x1x4x128xbf16> to vector<4x128xbf16>
    %c7 = arith.constant 7 : index
    %c0_53 = arith.constant 0 : index
    %c0_54 = arith.constant 0 : index
    %46 = vector.load %arg3[%c7, %c0_53, %c0_54] : memref<25x8x4xbf16, #tpu.memory_space<vmem>>, vector<1x8x4xbf16>
    %47 = vector.shape_cast %46 : vector<1x8x4xbf16> to vector<8x4xbf16>
    %cst_55 = arith.constant dense<0.000000e+00> : vector<8x128xf32>
    %48 = tpu.matmul %47, %45, %cst_55 {dimension_numbers = #tpu.dot_dimension_numbers<[1], [0], [0], [1], [0, 0, 1, 1], [], []>} : vector<8x4xbf16>, vector<4x128xbf16>, vector<8x128xf32> -> vector<8x128xf32>
    %49 = arith.addf %43, %48 : vector<8x128xf32>
    %c0_56 = arith.constant 0 : index
    %c3_57 = arith.constant 3 : index
    %c0_58 = arith.constant 0 : index
    %c1_59 = arith.constant 1 : index
    %50 = vector.load %arg2[%c0_56, %c3_57, %c0_58, %c1_59] : memref<1x4x4x256xbf16, #tpu.memory_space<vmem>>, vector<1x1x4x128xbf16>
    %51 = vector.shape_cast %50 : vector<1x1x4x128xbf16> to vector<4x128xbf16>
    %c8 = arith.constant 8 : index
    %c0_60 = arith.constant 0 : index
    %c0_61 = arith.constant 0 : index
    %52 = vector.load %arg3[%c8, %c0_60, %c0_61] : memref<25x8x4xbf16, #tpu.memory_space<vmem>>, vector<1x8x4xbf16>
    %53 = vector.shape_cast %52 : vector<1x8x4xbf16> to vector<8x4xbf16>
    %cst_62 = arith.constant dense<0.000000e+00> : vector<8x128xf32>
    %54 = tpu.matmul %53, %51, %cst_62 {dimension_numbers = #tpu.dot_dimension_numbers<[1], [0], [0], [1], [0, 0, 1, 1], [], []>} : vector<8x4xbf16>, vector<4x128xbf16>, vector<8x128xf32> -> vector<8x128xf32>
    %55 = arith.addf %49, %54 : vector<8x128xf32>
    %c0_63 = arith.constant 0 : index
    %c2_64 = arith.constant 2 : index
    %c0_65 = arith.constant 0 : index
    %c2_66 = arith.constant 2 : index
    %56 = vector.load %arg2[%c0_63, %c2_64, %c0_65, %c2_66] : memref<1x4x4x256xbf16, #tpu.memory_space<vmem>>, vector<1x1x4x128xbf16>
    %57 = vector.shape_cast %56 : vector<1x1x4x128xbf16> to vector<4x128xbf16>
    %c9 = arith.constant 9 : index
    %c0_67 = arith.constant 0 : index
    %c0_68 = arith.constant 0 : index
    %58 = vector.load %arg3[%c9, %c0_67, %c0_68] : memref<25x8x4xbf16, #tpu.memory_space<vmem>>, vector<1x8x4xbf16>
    %59 = vector.shape_cast %58 : vector<1x8x4xbf16> to vector<8x4xbf16>
    %cst_69 = arith.constant dense<0.000000e+00> : vector<8x128xf32>
    %60 = tpu.matmul %59, %57, %cst_69 {dimension_numbers = #tpu.dot_dimension_numbers<[1], [0], [0], [1], [0, 0, 1, 1], [], []>} : vector<8x4xbf16>, vector<4x128xbf16>, vector<8x128xf32> -> vector<8x128xf32>
    %61 = arith.addf %55, %60 : vector<8x128xf32>
    %c0_70 = arith.constant 0 : index
    %c0_71 = arith.constant 0 : index
    %c0_72 = arith.constant 0 : index
    %c10 = arith.constant 10 : index
    %62 = vector.load %arg2[%c0_70, %c0_71, %c0_72, %c10] : memref<1x4x4x256xbf16, #tpu.memory_space<vmem>>, vector<1x1x4x128xbf16>
    %63 = vector.shape_cast %62 : vector<1x1x4x128xbf16> to vector<4x128xbf16>
    %c10_73 = arith.constant 10 : index
    %c0_74 = arith.constant 0 : index
    %c0_75 = arith.constant 0 : index
    %64 = vector.load %arg3[%c10_73, %c0_74, %c0_75] : memref<25x8x4xbf16, #tpu.memory_space<vmem>>, vector<1x8x4xbf16>
    %65 = vector.shape_cast %64 : vector<1x8x4xbf16> to vector<8x4xbf16>
    %cst_76 = arith.constant dense<0.000000e+00> : vector<8x128xf32>
    %66 = tpu.matmul %65, %63, %cst_76 {dimension_numbers = #tpu.dot_dimension_numbers<[1], [0], [0], [1], [0, 0, 1, 1], [], []>} : vector<8x4xbf16>, vector<4x128xbf16>, vector<8x128xf32> -> vector<8x128xf32>
    %67 = arith.addf %61, %66 : vector<8x128xf32>
    %c0_77 = arith.constant 0 : index
    %c1_78 = arith.constant 1 : index
    %c0_79 = arith.constant 0 : index
    %c10_80 = arith.constant 10 : index
    %68 = vector.load %arg2[%c0_77, %c1_78, %c0_79, %c10_80] : memref<1x4x4x256xbf16, #tpu.memory_space<vmem>>, vector<1x1x4x128xbf16>
    %69 = vector.shape_cast %68 : vector<1x1x4x128xbf16> to vector<4x128xbf16>
    %c11 = arith.constant 11 : index
    %c0_81 = arith.constant 0 : index
    %c0_82 = arith.constant 0 : index
    %70 = vector.load %arg3[%c11, %c0_81, %c0_82] : memref<25x8x4xbf16, #tpu.memory_space<vmem>>, vector<1x8x4xbf16>
    %71 = vector.shape_cast %70 : vector<1x8x4xbf16> to vector<8x4xbf16>
    %cst_83 = arith.constant dense<0.000000e+00> : vector<8x128xf32>
    %72 = tpu.matmul %71, %69, %cst_83 {dimension_numbers = #tpu.dot_dimension_numbers<[1], [0], [0], [1], [0, 0, 1, 1], [], []>} : vector<8x4xbf16>, vector<4x128xbf16>, vector<8x128xf32> -> vector<8x128xf32>
    %73 = arith.addf %67, %72 : vector<8x128xf32>
    %c0_84 = arith.constant 0 : index
    %c0_85 = arith.constant 0 : index
    %c0_86 = arith.constant 0 : index
    %c11_87 = arith.constant 11 : index
    %74 = vector.load %arg2[%c0_84, %c0_85, %c0_86, %c11_87] : memref<1x4x4x256xbf16, #tpu.memory_space<vmem>>, vector<1x1x4x128xbf16>
    %75 = vector.shape_cast %74 : vector<1x1x4x128xbf16> to vector<4x128xbf16>
    %c12 = arith.constant 12 : index
    %c0_88 = arith.constant 0 : index
    %c0_89 = arith.constant 0 : index
    %76 = vector.load %arg3[%c12, %c0_88, %c0_89] : memref<25x8x4xbf16, #tpu.memory_space<vmem>>, vector<1x8x4xbf16>
    %77 = vector.shape_cast %76 : vector<1x8x4xbf16> to vector<8x4xbf16>
    %cst_90 = arith.constant dense<0.000000e+00> : vector<8x128xf32>
    %78 = tpu.matmul %77, %75, %cst_90 {dimension_numbers = #tpu.dot_dimension_numbers<[1], [0], [0], [1], [0, 0, 1, 1], [], []>} : vector<8x4xbf16>, vector<4x128xbf16>, vector<8x128xf32> -> vector<8x128xf32>
    %79 = arith.addf %73, %78 : vector<8x128xf32>
    %c0_91 = arith.constant 0 : index
    %c1_92 = arith.constant 1 : index
    %c0_93 = arith.constant 0 : index
    %c11_94 = arith.constant 11 : index
    %80 = vector.load %arg2[%c0_91, %c1_92, %c0_93, %c11_94] : memref<1x4x4x256xbf16, #tpu.memory_space<vmem>>, vector<1x1x4x128xbf16>
    %81 = vector.shape_cast %80 : vector<1x1x4x128xbf16> to vector<4x128xbf16>
    %c13 = arith.constant 13 : index
    %c0_95 = arith.constant 0 : index
    %c0_96 = arith.constant 0 : index
    %82 = vector.load %arg3[%c13, %c0_95, %c0_96] : memref<25x8x4xbf16, #tpu.memory_space<vmem>>, vector<1x8x4xbf16>
    %83 = vector.shape_cast %82 : vector<1x8x4xbf16> to vector<8x4xbf16>
    %cst_97 = arith.constant dense<0.000000e+00> : vector<8x128xf32>
    %84 = tpu.matmul %83, %81, %cst_97 {dimension_numbers = #tpu.dot_dimension_numbers<[1], [0], [0], [1], [0, 0, 1, 1], [], []>} : vector<8x4xbf16>, vector<4x128xbf16>, vector<8x128xf32> -> vector<8x128xf32>
    %85 = arith.addf %79, %84 : vector<8x128xf32>
    %c0_98 = arith.constant 0 : index
    %c0_99 = arith.constant 0 : index
    %c0_100 = arith.constant 0 : index
    %c12_101 = arith.constant 12 : index
    %86 = vector.load %arg2[%c0_98, %c0_99, %c0_100, %c12_101] : memref<1x4x4x256xbf16, #tpu.memory_space<vmem>>, vector<1x1x4x128xbf16>
    %87 = vector.shape_cast %86 : vector<1x1x4x128xbf16> to vector<4x128xbf16>
    %c14 = arith.constant 14 : index
    %c0_102 = arith.constant 0 : index
    %c0_103 = arith.constant 0 : index
    %88 = vector.load %arg3[%c14, %c0_102, %c0_103] : memref<25x8x4xbf16, #tpu.memory_space<vmem>>, vector<1x8x4xbf16>
    %89 = vector.shape_cast %88 : vector<1x8x4xbf16> to vector<8x4xbf16>
    %cst_104 = arith.constant dense<0.000000e+00> : vector<8x128xf32>
    %90 = tpu.matmul %89, %87, %cst_104 {dimension_numbers = #tpu.dot_dimension_numbers<[1], [0], [0], [1], [0, 0, 1, 1], [], []>} : vector<8x4xbf16>, vector<4x128xbf16>, vector<8x128xf32> -> vector<8x128xf32>
    %91 = arith.addf %85, %90 : vector<8x128xf32>
    %c0_105 = arith.constant 0 : index
    %c2_106 = arith.constant 2 : index
    %c0_107 = arith.constant 0 : index
    %c10_108 = arith.constant 10 : index
    %92 = vector.load %arg2[%c0_105, %c2_106, %c0_107, %c10_108] : memref<1x4x4x256xbf16, #tpu.memory_space<vmem>>, vector<1x1x4x128xbf16>
    %93 = vector.shape_cast %92 : vector<1x1x4x128xbf16> to vector<4x128xbf16>
    %c15 = arith.constant 15 : index
    %c0_109 = arith.constant 0 : index
    %c0_110 = arith.constant 0 : index
    %94 = vector.load %arg3[%c15, %c0_109, %c0_110] : memref<25x8x4xbf16, #tpu.memory_space<vmem>>, vector<1x8x4xbf16>
    %95 = vector.shape_cast %94 : vector<1x8x4xbf16> to vector<8x4xbf16>
    %cst_111 = arith.constant dense<0.000000e+00> : vector<8x128xf32>
    %96 = tpu.matmul %95, %93, %cst_111 {dimension_numbers = #tpu.dot_dimension_numbers<[1], [0], [0], [1], [0, 0, 1, 1], [], []>} : vector<8x4xbf16>, vector<4x128xbf16>, vector<8x128xf32> -> vector<8x128xf32>
    %97 = arith.addf %91, %96 : vector<8x128xf32>
    %c0_112 = arith.constant 0 : index
    %c3_113 = arith.constant 3 : index
    %c0_114 = arith.constant 0 : index
    %c10_115 = arith.constant 10 : index
    %98 = vector.load %arg2[%c0_112, %c3_113, %c0_114, %c10_115] : memref<1x4x4x256xbf16, #tpu.memory_space<vmem>>, vector<1x1x4x128xbf16>
    %99 = vector.shape_cast %98 : vector<1x1x4x128xbf16> to vector<4x128xbf16>
    %c16 = arith.constant 16 : index
    %c0_116 = arith.constant 0 : index
    %c0_117 = arith.constant 0 : index
    %100 = vector.load %arg3[%c16, %c0_116, %c0_117] : memref<25x8x4xbf16, #tpu.memory_space<vmem>>, vector<1x8x4xbf16>
    %101 = vector.shape_cast %100 : vector<1x8x4xbf16> to vector<8x4xbf16>
    %cst_118 = arith.constant dense<0.000000e+00> : vector<8x128xf32>
    %102 = tpu.matmul %101, %99, %cst_118 {dimension_numbers = #tpu.dot_dimension_numbers<[1], [0], [0], [1], [0, 0, 1, 1], [], []>} : vector<8x4xbf16>, vector<4x128xbf16>, vector<8x128xf32> -> vector<8x128xf32>
    %103 = arith.addf %97, %102 : vector<8x128xf32>
    %c0_119 = arith.constant 0 : index
    %c2_120 = arith.constant 2 : index
    %c0_121 = arith.constant 0 : index
    %c11_122 = arith.constant 11 : index
    %104 = vector.load %arg2[%c0_119, %c2_120, %c0_121, %c11_122] : memref<1x4x4x256xbf16, #tpu.memory_space<vmem>>, vector<1x1x4x128xbf16>
    %105 = vector.shape_cast %104 : vector<1x1x4x128xbf16> to vector<4x128xbf16>
    %c17 = arith.constant 17 : index
    %c0_123 = arith.constant 0 : index
    %c0_124 = arith.constant 0 : index
    %106 = vector.load %arg3[%c17, %c0_123, %c0_124] : memref<25x8x4xbf16, #tpu.memory_space<vmem>>, vector<1x8x4xbf16>
    %107 = vector.shape_cast %106 : vector<1x8x4xbf16> to vector<8x4xbf16>
    %cst_125 = arith.constant dense<0.000000e+00> : vector<8x128xf32>
    %108 = tpu.matmul %107, %105, %cst_125 {dimension_numbers = #tpu.dot_dimension_numbers<[1], [0], [0], [1], [0, 0, 1, 1], [], []>} : vector<8x4xbf16>, vector<4x128xbf16>, vector<8x128xf32> -> vector<8x128xf32>
    %109 = arith.addf %103, %108 : vector<8x128xf32>
    %c0_126 = arith.constant 0 : index
    %c3_127 = arith.constant 3 : index
    %c0_128 = arith.constant 0 : index
    %c11_129 = arith.constant 11 : index
    %110 = vector.load %arg2[%c0_126, %c3_127, %c0_128, %c11_129] : memref<1x4x4x256xbf16, #tpu.memory_space<vmem>>, vector<1x1x4x128xbf16>
    %111 = vector.shape_cast %110 : vector<1x1x4x128xbf16> to vector<4x128xbf16>
    %c18 = arith.constant 18 : index
    %c0_130 = arith.constant 0 : index
    %c0_131 = arith.constant 0 : index
    %112 = vector.load %arg3[%c18, %c0_130, %c0_131] : memref<25x8x4xbf16, #tpu.memory_space<vmem>>, vector<1x8x4xbf16>
    %113 = vector.shape_cast %112 : vector<1x8x4xbf16> to vector<8x4xbf16>
    %cst_132 = arith.constant dense<0.000000e+00> : vector<8x128xf32>
    %114 = tpu.matmul %113, %111, %cst_132 {dimension_numbers = #tpu.dot_dimension_numbers<[1], [0], [0], [1], [0, 0, 1, 1], [], []>} : vector<8x4xbf16>, vector<4x128xbf16>, vector<8x128xf32> -> vector<8x128xf32>
    %115 = arith.addf %109, %114 : vector<8x128xf32>
    %c0_133 = arith.constant 0 : index
    %c2_134 = arith.constant 2 : index
    %c0_135 = arith.constant 0 : index
    %c12_136 = arith.constant 12 : index
    %116 = vector.load %arg2[%c0_133, %c2_134, %c0_135, %c12_136] : memref<1x4x4x256xbf16, #tpu.memory_space<vmem>>, vector<1x1x4x128xbf16>
    %117 = vector.shape_cast %116 : vector<1x1x4x128xbf16> to vector<4x128xbf16>
    %c19 = arith.constant 19 : index
    %c0_137 = arith.constant 0 : index
    %c0_138 = arith.constant 0 : index
    %118 = vector.load %arg3[%c19, %c0_137, %c0_138] : memref<25x8x4xbf16, #tpu.memory_space<vmem>>, vector<1x8x4xbf16>
    %119 = vector.shape_cast %118 : vector<1x8x4xbf16> to vector<8x4xbf16>
    %cst_139 = arith.constant dense<0.000000e+00> : vector<8x128xf32>
    %120 = tpu.matmul %119, %117, %cst_139 {dimension_numbers = #tpu.dot_dimension_numbers<[1], [0], [0], [1], [0, 0, 1, 1], [], []>} : vector<8x4xbf16>, vector<4x128xbf16>, vector<8x128xf32> -> vector<8x128xf32>
    %121 = arith.addf %115, %120 : vector<8x128xf32>
    %c0_140 = arith.constant 0 : index
    %c0_141 = arith.constant 0 : index
    %c0_142 = arith.constant 0 : index
    %c20 = arith.constant 20 : index
    %122 = vector.load %arg2[%c0_140, %c0_141, %c0_142, %c20] : memref<1x4x4x256xbf16, #tpu.memory_space<vmem>>, vector<1x1x4x128xbf16>
    %123 = vector.shape_cast %122 : vector<1x1x4x128xbf16> to vector<4x128xbf16>
    %c20_143 = arith.constant 20 : index
    %c0_144 = arith.constant 0 : index
    %c0_145 = arith.constant 0 : index
    %124 = vector.load %arg3[%c20_143, %c0_144, %c0_145] : memref<25x8x4xbf16, #tpu.memory_space<vmem>>, vector<1x8x4xbf16>
    %125 = vector.shape_cast %124 : vector<1x8x4xbf16> to vector<8x4xbf16>
    %cst_146 = arith.constant dense<0.000000e+00> : vector<8x128xf32>
    %126 = tpu.matmul %125, %123, %cst_146 {dimension_numbers = #tpu.dot_dimension_numbers<[1], [0], [0], [1], [0, 0, 1, 1], [], []>} : vector<8x4xbf16>, vector<4x128xbf16>, vector<8x128xf32> -> vector<8x128xf32>
    %127 = arith.addf %121, %126 : vector<8x128xf32>
    %c0_147 = arith.constant 0 : index
    %c1_148 = arith.constant 1 : index
    %c0_149 = arith.constant 0 : index
    %c20_150 = arith.constant 20 : index
    %128 = vector.load %arg2[%c0_147, %c1_148, %c0_149, %c20_150] : memref<1x4x4x256xbf16, #tpu.memory_space<vmem>>, vector<1x1x4x128xbf16>
    %129 = vector.shape_cast %128 : vector<1x1x4x128xbf16> to vector<4x128xbf16>
    %c21 = arith.constant 21 : index
    %c0_151 = arith.constant 0 : index
    %c0_152 = arith.constant 0 : index
    %130 = vector.load %arg3[%c21, %c0_151, %c0_152] : memref<25x8x4xbf16, #tpu.memory_space<vmem>>, vector<1x8x4xbf16>
    %131 = vector.shape_cast %130 : vector<1x8x4xbf16> to vector<8x4xbf16>
    %cst_153 = arith.constant dense<0.000000e+00> : vector<8x128xf32>
    %132 = tpu.matmul %131, %129, %cst_153 {dimension_numbers = #tpu.dot_dimension_numbers<[1], [0], [0], [1], [0, 0, 1, 1], [], []>} : vector<8x4xbf16>, vector<4x128xbf16>, vector<8x128xf32> -> vector<8x128xf32>
    %133 = arith.addf %127, %132 : vector<8x128xf32>
    %c0_154 = arith.constant 0 : index
    %c0_155 = arith.constant 0 : index
    %c0_156 = arith.constant 0 : index
    %c21_157 = arith.constant 21 : index
    %134 = vector.load %arg2[%c0_154, %c0_155, %c0_156, %c21_157] : memref<1x4x4x256xbf16, #tpu.memory_space<vmem>>, vector<1x1x4x128xbf16>
    %135 = vector.shape_cast %134 : vector<1x1x4x128xbf16> to vector<4x128xbf16>
    %c22 = arith.constant 22 : index
    %c0_158 = arith.constant 0 : index
    %c0_159 = arith.constant 0 : index
    %136 = vector.load %arg3[%c22, %c0_158, %c0_159] : memref<25x8x4xbf16, #tpu.memory_space<vmem>>, vector<1x8x4xbf16>
    %137 = vector.shape_cast %136 : vector<1x8x4xbf16> to vector<8x4xbf16>
    %cst_160 = arith.constant dense<0.000000e+00> : vector<8x128xf32>
    %138 = tpu.matmul %137, %135, %cst_160 {dimension_numbers = #tpu.dot_dimension_numbers<[1], [0], [0], [1], [0, 0, 1, 1], [], []>} : vector<8x4xbf16>, vector<4x128xbf16>, vector<8x128xf32> -> vector<8x128xf32>
    %139 = arith.addf %133, %138 : vector<8x128xf32>
    %c0_161 = arith.constant 0 : index
    %c1_162 = arith.constant 1 : index
    %c0_163 = arith.constant 0 : index
    %c21_164 = arith.constant 21 : index
    %140 = vector.load %arg2[%c0_161, %c1_162, %c0_163, %c21_164] : memref<1x4x4x256xbf16, #tpu.memory_space<vmem>>, vector<1x1x4x128xbf16>
    %141 = vector.shape_cast %140 : vector<1x1x4x128xbf16> to vector<4x128xbf16>
    %c23 = arith.constant 23 : index
    %c0_165 = arith.constant 0 : index
    %c0_166 = arith.constant 0 : index
    %142 = vector.load %arg3[%c23, %c0_165, %c0_166] : memref<25x8x4xbf16, #tpu.memory_space<vmem>>, vector<1x8x4xbf16>
    %143 = vector.shape_cast %142 : vector<1x8x4xbf16> to vector<8x4xbf16>
    %cst_167 = arith.constant dense<0.000000e+00> : vector<8x128xf32>
    %144 = tpu.matmul %143, %141, %cst_167 {dimension_numbers = #tpu.dot_dimension_numbers<[1], [0], [0], [1], [0, 0, 1, 1], [], []>} : vector<8x4xbf16>, vector<4x128xbf16>, vector<8x128xf32> -> vector<8x128xf32>
    %145 = arith.addf %139, %144 : vector<8x128xf32>
    %c0_168 = arith.constant 0 : index
    %c0_169 = arith.constant 0 : index
    %c0_170 = arith.constant 0 : index
    %c22_171 = arith.constant 22 : index
    %146 = vector.load %arg2[%c0_168, %c0_169, %c0_170, %c22_171] : memref<1x4x4x256xbf16, #tpu.memory_space<vmem>>, vector<1x1x4x128xbf16>
    %147 = vector.shape_cast %146 : vector<1x1x4x128xbf16> to vector<4x128xbf16>
    %c24 = arith.constant 24 : index
    %c0_172 = arith.constant 0 : index
    %c0_173 = arith.constant 0 : index
    %148 = vector.load %arg3[%c24, %c0_172, %c0_173] : memref<25x8x4xbf16, #tpu.memory_space<vmem>>, vector<1x8x4xbf16>
    %149 = vector.shape_cast %148 : vector<1x8x4xbf16> to vector<8x4xbf16>
    %cst_174 = arith.constant dense<0.000000e+00> : vector<8x128xf32>
    %150 = tpu.matmul %149, %147, %cst_174 {dimension_numbers = #tpu.dot_dimension_numbers<[1], [0], [0], [1], [0, 0, 1, 1], [], []>} : vector<8x4xbf16>, vector<4x128xbf16>, vector<8x128xf32> -> vector<8x128xf32>
    %151 = arith.addf %145, %150 : vector<8x128xf32>
    %c0_175 = arith.constant 0 : index
    %c0_176 = arith.constant 0 : index
    %c0_177 = arith.constant 0 : index
    %152 = vector.load %arg5[%c0_175, %c0_176, %c0_177] : memref<1x8x128xf32, #tpu.memory_space<vmem>>, vector<1x8x128xf32>
    %153 = vector.shape_cast %151 : vector<8x128xf32> to vector<1x8x128xf32>
    %154 = arith.addf %152, %153 : vector<1x8x128xf32>
    %c0_178 = arith.constant 0 : index
    %c0_179 = arith.constant 0 : index
    %c0_180 = arith.constant 0 : index
    %155 = vector.load %arg5[%c0_178, %c0_179, %c0_180] : memref<1x8x128xf32, #tpu.memory_space<vmem>>, vector<1x8x128xf32>
    tpu.vector_store %arg5[%c0_178, %c0_179, %c0_180], %154 {strides = array<i32>} : memref<1x8x128xf32, #tpu.memory_space<vmem>>, vector<1x8x128xf32>,
    %c0_i32_181 = arith.constant 0 : i32
    %156 = arith.cmpi eq, %arg1, %c0_i32_181 : i32
    %157 = arith.extui %156 : i1 to i32
    %c0_i32_182 = arith.constant 0 : i32
    %158 = arith.cmpi ne, %157, %c0_i32_182 : i32
    scf.if %158 {
      %c0_183 = arith.constant 0 : index
      %c0_184 = arith.constant 0 : index
      %c0_185 = arith.constant 0 : index
      %159 = vector.load %arg5[%c0_183, %c0_184, %c0_185] : memref<1x8x128xf32, #tpu.memory_space<vmem>>, vector<1x8x128xf32>
      %c0_186 = arith.constant 0 : index
      %c0_187 = arith.constant 0 : index
      %160 = vector.load %arg4[%c0_186, %c0_187] : memref<8x1xf32, #tpu.memory_space<vmem>>, vector<8x1xf32>
      %161 = vector.shape_cast %160 : vector<8x1xf32> to vector<1x8x1xf32>
      %162 = vector.broadcast %161 : vector<1x8x1xf32> to vector<1x8x128xf32>
      %163 = arith.addf %159, %162 : vector<1x8x128xf32>
      %cst_188 = arith.constant 0.000000e+00 : f32
      %164 = vector.broadcast %cst_188 : f32 to vector<1x8x128xf32>
      %165 = arith.cmpf oge, %163, %164 : vector<1x8x128xf32>
      %cst_189 = arith.constant 1.000000e-01 : f32
      %166 = vector.broadcast %cst_189 : f32 to vector<1x8x128xf32>
      %167 = arith.mulf %166, %163 : vector<1x8x128xf32>
      %168 = arith.select %165, %163, %167 : vector<1x8x128xi1>, vector<1x8x128xf32>
      %c0_190 = arith.constant 0 : index
      %c0_191 = arith.constant 0 : index
      %c0_192 = arith.constant 0 : index
      %169 = vector.load %arg5[%c0_190, %c0_191, %c0_192] : memref<1x8x128xf32, #tpu.memory_space<vmem>>, vector<1x8x128xf32>
      tpu.vector_store %arg5[%c0_190, %c0_191, %c0_192], %168 {strides = array<i32>} : memref<1x8x128xf32, #tpu.memory_space<vmem>>, vector<1x8x128xf32>,
    } else {
    }
    return
  }
  func.func @transform_0(%arg0: i32, %arg1: i32) -> (i32, i32, i32, i32) {
    %c0_i32 = arith.constant 0 : i32
    %c0_i32_0 = arith.constant 0 : i32
    %c0_i32_1 = arith.constant 0 : i32
    return %arg0, %c0_i32, %arg1, %c0_i32_0 : i32, i32, i32, i32
  }
  func.func @transform_1(%arg0: i32, %arg1: i32) -> (i32, i32, i32) {
    %c0_i32 = arith.constant 0 : i32
    %c0_i32_0 = arith.constant 0 : i32
    %c0_i32_1 = arith.constant 0 : i32
    return %c0_i32, %c0_i32_0, %arg1 : i32, i32, i32
  }
  func.func @transform_2(%arg0: i32, %arg1: i32) -> (i32, i32) {
    %c0_i32 = arith.constant 0 : i32
    %c0_i32_0 = arith.constant 0 : i32
    %c0_i32_1 = arith.constant 0 : i32
    return %c0_i32, %c0_i32_0 : i32, i32
  }
  func.func @transform_3(%arg0: i32, %arg1: i32) -> (i32, i32, i32) {
    %c0_i32 = arith.constant 0 : i32
    %c0_i32_0 = arith.constant 0 : i32
    %c0_i32_1 = arith.constant 0 : i32
    return %arg0, %c0_i32, %c0_i32_0 : i32, i32, i32
  }
}

</mosaic_0001>

<bundles_post_ra>
// kernel: _lambda_.1
= control target key start
LH: loop header
LB: loop body
LE: loop exit
PB: predicated region body
PF: predicated region fallthrough
CT: control target
= control target key end

     0   :  { %s2265_s12 = smov 0   ;;  %s2267_s13 = smov 0   ;;  %s2577_s0 = inlined_call_operand.vmem [shape: bf16[2,4,4,256], index: 0, kind: input, shape index: {}]   ;;  %s2578_s1 = inlined_call_operand.vmem [shape: bf16[25,8,4], index: 1, kind: input, shape index: {}]   ;;  %s2579_s2 = inlined_call_operand.vmem [shape: f32[8,1], index: 2, kind: input, shape index: {}]   ;;  %s2580_s3 = inlined_call_operand.vmem [shape: f32[2,8,128], index: 3, kind: output, shape index: {}]  }
   0x1   :  { %s2269_s14 = smov 0  }
   0x2 LB: > { %s25_s15 = sadd.s32 1, %s2228_s13  ;;  %p1881_p0 = scmp.ge.s32.totalorder %s2232_s14, 1  ;;  %s2232_s14 = sphi %s2269_s14, %s13_s14   ;;  %s2228_s13 = sphi %s2267_s13, %s2582_s13   ;;  %s2224_s12 = sphi %s2265_s12, %s2581_s12  }
   0x3   : > { %p27_p1 = scmp.ge.s32.totalorder %s25_s15, 2  ;;  %p164_p2 = scmp.lt.s32.totalorder %s2232_s14, 3 }
   0x5   : > { %s2584_s15 = smov (%p27_p1, %s25_s15), 0  ;;  %p165_p3 = pnand %p1881_p0, %p164_p2 }
   0x6   : > { %p195_p4 = scmp.lt.s32.totalorder (!%p165_p3), %s2224_s12, 1  ;;  %s2236_s20 = smov (!%p165_p3), 127  }
   0x7   : > { %168 = sbr.rel (%p165_p3) target bundleno = 430 (0x1ae), region = 32  ;;  %s2237_s25 = smov (!%p165_p3), 126  }
   0x8   : > { %s2238_s26 = smov (!%p165_p3), 118   ;;  %s2239_s27 = smov (!%p165_p3), 117  }
   0x9   : > { %s2240_s28 = smov (!%p165_p3), 116   ;;  %s2241_s29 = smov (!%p165_p3), 108  }
   0xa   : > { %s2242_s30 = smov (!%p165_p3), 107   ;;  %s2243_s4 = smov (!%p165_p3), 106  }
   0xc   : > { %v2234_v0 = vmov 0.0   ;;  %vm2235_vm0 = vmmov 0   ;;  %s2586_s12 = smov (!%p195_p4, %s2224_s12), 1  ;;  %vm228_vm1 = vcmask 1041408   ;;  %v1886_v7 = vld [vmem:[%s2578_s1 + $0x4] sm:$0xf] }
   0xd   : > { %2024 = vmatprep.subr.bf16.mxu0 %v2234_v0  ;;  %2026 = vmatprep.mubr.msk.bf16.mxu0 %vm2235_vm0, %v2234_v0  ;;  %s1973_s16 = sshll.u32 %s2586_s12, 4  ;;  %vm224_vm2 = vcmask 31744   ;;  %v219_v10 = vld [vmem:[%s2578_s1] sm:$0xf]  ;;  %v2244_v16 = vmov 0   ;;  %vm334_vm3 = vcmask 1039360  }
   0xe   : > { %2030 = vmatprep.subr.bf16.mxu1 %v2234_v0  ;;  %2032 = vmatprep.mubr.msk.bf16.mxu1 %vm2235_vm0, %v2234_v0  ;;  %s2295_s19 = scalar_lea.vmem %s2577_s0, %s1973_s16  ;;  %v1779_v15 = vld [vmem:[%s2579_s2] sm:$0xff]  ;;  %vm463_vm4 = vcmask 1031168   ;;  %v1893_v26 = vld [vmem:[%s2578_s1 + $0xc] sm:$0xf]  ;;  %v1889_v27 = vld [vmem:[%s2578_s1 + $0x8] sm:$0xf] }
   0xf   : > { %v2298_v1 = vld.sshfl [vmem:[%s2295_s19 + $0x4] sm:$0x33 pattern:$0x76325410]  ;;  %v218_v8 = vld [vmem:[%s2295_s19] sm:$0x3]  ;;  %2209 = vset.pattern.permute.xlu0 %v2244_v16 }
  0x10   : > { %395 = vrot.lane.b32.xlu1 %v2298_v1, %s2236_s20  ;;  %v2304_v2 = vcombine.high %v2298_v1, %v2298_v1  ;;  %v2307_v3 = vld.sshfl [vmem:[%s2295_s19] sm:$0x33 pattern:$0x76325410]  ;;  %v1885_v4 = vld [vmem:[%s2295_s19 + $0x4] sm:$0x3] }
  0x11   : > { %330 = vrot.lane.b32.xlu0 %v2307_v3, %s2236_s20  ;;  %v2314_v5 = vcombine.high %v2307_v3, %v2307_v3  ;;  %v230_v6 = vsel %vm228_vm1, %v1885_v4, 0  ;;  %v276_v9 = vsel %vm228_vm1, %v218_v8, 0  ;;  %v1907_v11 = vld.sshfl [vmem:[%s2295_s19 + $0x8] sm:$0x33 pattern:$0x76325410] }
  0x12   : > { %2025 = vmatpush3.bf16.msra.mxu0 %v230_v6  ;;  %2031 = vmatpush3.bf16.msra.mxu1 %v276_v9  ;;  %v625_v12 = vcombine.high %v1907_v11, %v1907_v11  ;;  %v1911_v13 = vld.sshfl [vmem:[%s2295_s19 + $0xc] sm:$0x33 pattern:$0x76325410]  ;;  %v1899_v22 = vld [vmem:[%s2295_s19 + $0x8] sm:$0x3] }
  0x13   : > { %2036 = vmatprep.subr.bf16.mxu0 %v2234_v0  ;;  %2042 = vmatprep.subr.bf16.mxu1 %v2234_v0  ;;  %v689_v14 = vcombine.high %v1911_v13, %v1911_v13  ;;  %v520_v29 = vsel %vm228_vm1, %v1899_v22, 0  ;;  %v1902_v36 = vld [vmem:[%s2295_s19 + $0xc] sm:$0x3]  ;;  %v1900_v37 = vld [vmem:[%s2578_s1 + $0x14] sm:$0xf]  ;;  %vm822_vm5 = vcmask 965632  }
  0x14   : > { %397 = vrot.lane.b32.xlu1 %v2304_v2, %s2236_s20  ;;  %v1896_v38 = vld [vmem:[%s2578_s1 + $0x10] sm:$0xf]  ;;  %v571_v41 = vsel %vm228_vm1, %v1902_v36, 0  ;;  %v1906_v47 = vld [vmem:[%s2578_s1 + $0x1c] sm:$0xf]  ;;  %vm951_vm6 = vcmask 957440  }
  0x15   : > { %332 = vrot.lane.b32.xlu0 %v2314_v5, %s2236_s20  ;;  %2027 = vmatmul.mubr.msk.bf16.vlgmr.msra.gmra.mxu0 %vm224_vm2, %v1886_v7  ;;  %v1903_v48 = vld [vmem:[%s2578_s1 + $0x18] sm:$0xf]  ;;  %v1914_v57 = vld [vmem:[%s2578_s1 + $0x24] sm:$0xf]  ;;  %v1910_v58 = vld [vmem:[%s2578_s1 + $0x20] sm:$0xf] }
  0x16   : > { %2038 = vmatprep.mubr.msk.bf16.mxu0 %vm2235_vm0, %v2234_v0  ;;  %2033 = vmatmul.mubr.msk.bf16.vlgmr.msra.gmra.mxu1 %vm224_vm2, %v219_v10  ;;  %v1921_v4 = vld [vmem:[%s2578_s1 + $0x2c] sm:$0xf]  ;;  %vm1080_vm7 = vcmask 949248   ;;  %vm1465_vm8 = vcmask 883712   ;;  %vm1594_vm9 = vcmask 875520   ;;  %vm1723_vm10 = vcmask 867328  }
  0x17   : > { %2044 = vmatprep.mubr.msk.bf16.mxu1 %vm2235_vm0, %v2234_v0  ;;  %s1884_s7 = sshll.u32 %s2586_s12, 3 }
  0x18   : > { %461 = vrot.lane.b32.xlu1 %v2314_v5, %s2237_s25  ;;  %s211_s10 = scalar_lea.vmem %s2580_s3, %s1884_s7 }
  0x19   : > { %459 = vrot.lane.b32.xlu0 %v2307_v3, %s2237_s25 }
  0x1c   : > { %628 = vrot.lane.b32.xlu1 %v625_v12, %s2236_s20 }
  0x1d   : > { %626 = vrot.lane.b32.xlu0 %v1907_v11, %s2236_s20 }
  0x20   : > { %692 = vrot.lane.b32.xlu1 %v689_v14, %s2236_s20 }
  0x21   : > { %690 = vrot.lane.b32.xlu0 %v1911_v13, %s2236_s20 }
  0x24   : > { %756 = vrot.lane.b32.xlu1 %v625_v12, %s2237_s25 }
  0x25   : > { %754 = vrot.lane.b32.xlu0 %v1907_v11, %s2237_s25 }
  0x28   : > { %820 = vrot.lane.b32.xlu1 %v2314_v5, %s2238_s26 }
  0x29   : > { %818 = vrot.lane.b32.xlu0 %v2307_v3, %s2238_s26 }
  0x2c   : > { %885 = vrot.lane.b32.xlu1 %v2304_v2, %s2238_s26 }
  0x2d   : > { %883 = vrot.lane.b32.xlu0 %v2298_v1, %s2238_s26 }
  0x30   : > { %949 = vrot.lane.b32.xlu1 %v2314_v5, %s2239_s27 }
  0x31   : > { %947 = vrot.lane.b32.xlu0 %v2307_v3, %s2239_s27 }
  0x34   : > { %1014 = vrot.lane.b32.xlu1 %v2304_v2, %s2239_s27 }
  0x35   : > { %1012 = vrot.lane.b32.xlu0 %v2298_v1, %s2239_s27 }
  0x38   : > { %1078 = vrot.lane.b32.xlu1 %v2314_v5, %s2240_s28 }
  0x39   : > { %1076 = vrot.lane.b32.xlu0 %v2307_v3, %s2240_s28 }
  0x3c   : > { %1143 = vrot.lane.b32.xlu1 %v625_v12, %s2238_s26 }
  0x3d   : > { %1141 = vrot.lane.b32.xlu0 %v1907_v11, %s2238_s26 }
  0x40   : > { %1207 = vrot.lane.b32.xlu1 %v689_v14, %s2238_s26 }
  0x41   : > { %1205 = vrot.lane.b32.xlu0 %v1911_v13, %s2238_s26 }
  0x44   : > { %1271 = vrot.lane.b32.xlu1 %v625_v12, %s2239_s27 }
  0x45   : > { %1269 = vrot.lane.b32.xlu0 %v1907_v11, %s2239_s27 }
  0x48   : > { %1335 = vrot.lane.b32.xlu1 %v689_v14, %s2239_s27  ;;  %v1928_v14 = vld [vmem:[%s2578_s1 + $0x34] sm:$0xf] }
  0x49   : > { %1333 = vrot.lane.b32.xlu0 %v1911_v13, %s2239_s27 }
  0x4c   : > { %1399 = vrot.lane.b32.xlu1 %v625_v12, %s2240_s28 }
  0x4d   : > { %1397 = vrot.lane.b32.xlu0 %v1907_v11, %s2240_s28 }
  0x50   : > { %1463 = vrot.lane.b32.xlu1 %v2314_v5, %s2241_s29 }
  0x51   : > { %1461 = vrot.lane.b32.xlu0 %v2307_v3, %s2241_s29 }
  0x54   : > { %1528 = vrot.lane.b32.xlu1 %v2304_v2, %s2241_s29 }
  0x55   : > { %1526 = vrot.lane.b32.xlu0 %v2298_v1, %s2241_s29 }
  0x58   : > { %1592 = vrot.lane.b32.xlu1 %v2314_v5, %s2242_s30 }
  0x59   : > { %1590 = vrot.lane.b32.xlu0 %v2307_v3, %s2242_s30 }
  0x5c   : > { %1657 = vrot.lane.b32.xlu1 %v2304_v2, %s2242_s30 }
  0x5d   : > { %1655 = vrot.lane.b32.xlu0 %v2298_v1, %s2242_s30 }
  0x60   : > { %1721 = vrot.lane.b32.xlu1 %v2314_v5, %s2243_s4  ;;  %v1917_v5 = vld [vmem:[%s2578_s1 + $0x28] sm:$0xf] }
  0x61   : > { %1719 = vrot.lane.b32.xlu0 %v2307_v3, %s2243_s4 }
  0x65   : > { %1782 = vperm.xlu0 %2209, %v1779_v15   ;;  %v1924_v15 = vld [vmem:[%s2578_s1 + $0x30] sm:$0xf] }
  0x82   : > { %v396_v17 = vpop.permute.xlu1 %395 }
  0x83   : > { %v331_v18 = vpop.permute.xlu0 %330 }
  0x86   : > { %v398_v19 = vpop.permute.xlu1 %397 }
  0x87   : > { %v399_v20 = vsel %vm334_vm3, %v396_v17, %v398_v19  ;;  %v333_v21 = vpop.permute.xlu0 %332 }
  0x88   : > { %v404_v23 = vsel %vm228_vm1, %v399_v20, 0  ;;  %v335_v24 = vsel %vm334_vm3, %v331_v18, %v333_v21 }
  0x89   : > { %v340_v25 = vsel %vm228_vm1, %v335_v24, 0  ;;  %2043 = vmatpush3.bf16.msra.mxu1 %v404_v23  ;;  %v1935_v24 = vld [vmem:[%s2578_s1 + $0x3c] sm:$0xf] }
  0x8a   : > { %2037 = vmatpush3.bf16.msra.mxu0 %v340_v25  ;;  %v462_v28 = vpop.permute.xlu1 %461  ;;  %2054 = vmatprep.subr.bf16.mxu1 %v2234_v0  ;;  %v1931_v25 = vld [vmem:[%s2578_s1 + $0x38] sm:$0xf] }
  0x8b   : > { %v460_v30 = vpop.permute.xlu0 %459  ;;  %2048 = vmatprep.subr.bf16.mxu0 %v2234_v0 }
  0x8c   : > { %v464_v31 = vsel %vm463_vm4, %v460_v30, %v462_v28  ;;  %2045 = vmatmul.mubr.msk.bf16.vlgmr.msra.gmra.mxu1 %vm224_vm2, %v1893_v26 }
  0x8d   : > { %2039 = vmatmul.mubr.msk.bf16.vlgmr.msra.gmra.mxu0 %vm224_vm2, %v1889_v27  ;;  %v469_v32 = vsel %vm228_vm1, %v464_v31, 0  ;;  %2055 = vmatpush3.bf16.msra.mxu1 %v520_v29 }
  0x8e   : > { %2049 = vmatpush3.bf16.msra.mxu0 %v469_v32  ;;  %2050 = vmatprep.mubr.msk.bf16.mxu0 %vm2235_vm0, %v2234_v0  ;;  %v629_v33 = vpop.permute.xlu1 %628 }
  0x8f   : > { %2056 = vmatprep.mubr.msk.bf16.mxu1 %vm2235_vm0, %v2234_v0  ;;  %v627_v34 = vpop.permute.xlu0 %626  ;;  %2060 = vmatprep.subr.bf16.mxu0 %v2234_v0 }
  0x90   : > { %v630_v35 = vsel %vm334_vm3, %v627_v34, %v629_v33  ;;  %2066 = vmatprep.subr.bf16.mxu1 %v2234_v0  ;;  %v1943_v34 = vld [vmem:[%s2578_s1 + $0x44] sm:$0xf] }
  0x91   : > { %v635_v39 = vsel %vm228_vm1, %v630_v35, 0  ;;  %v1939_v35 = vld [vmem:[%s2578_s1 + $0x40] sm:$0xf] }
  0x92   : > { %v693_v40 = vpop.permute.xlu1 %692 }
  0x93   : > { %v691_v42 = vpop.permute.xlu0 %690 }
  0x94   : > { %2057 = vmatmul.mubr.msk.bf16.vlgmr.msra.gmra.mxu1 %vm224_vm2, %v1900_v37  ;;  %v694_v45 = vsel %vm334_vm3, %v691_v42, %v693_v40 }
  0x95   : > { %2051 = vmatmul.mubr.msk.bf16.vlgmr.msra.gmra.mxu0 %vm224_vm2, %v1896_v38  ;;  %2067 = vmatpush3.bf16.msra.mxu1 %v635_v39  ;;  %v699_v51 = vsel %vm228_vm1, %v694_v45, 0  ;;  %v1947_v45 = vld [vmem:[%s2578_s1 + $0x48] sm:$0xf] }
  0x96   : > { %2061 = vmatpush3.bf16.msra.mxu0 %v571_v41  ;;  %2062 = vmatprep.mubr.msk.bf16.mxu0 %vm2235_vm0, %v2234_v0  ;;  %v757_v43 = vpop.permute.xlu1 %756 }
  0x97   : > { %2068 = vmatprep.mubr.msk.bf16.mxu1 %vm2235_vm0, %v2234_v0  ;;  %v755_v44 = vpop.permute.xlu0 %754  ;;  %2072 = vmatprep.subr.bf16.mxu0 %v2234_v0 }
  0x98   : > { %v758_v46 = vsel %vm463_vm4, %v755_v44, %v757_v43  ;;  %2078 = vmatprep.subr.bf16.mxu1 %v2234_v0  ;;  %v1951_v44 = vld [vmem:[%s2578_s1 + $0x4c] sm:$0xf] }
  0x99   : > { %v763_v49 = vsel %vm228_vm1, %v758_v46, 0 }
  0x9a   : > { %v821_v50 = vpop.permute.xlu1 %820 }
  0x9b   : > { %v819_v52 = vpop.permute.xlu0 %818 }
  0x9c   : > { %2069 = vmatmul.mubr.msk.bf16.vlgmr.msra.gmra.mxu1 %vm224_vm2, %v1906_v47  ;;  %v823_v55 = vsel %vm822_vm5, %v819_v52, %v821_v50 }
  0x9d   : > { %2063 = vmatmul.mubr.msk.bf16.vlgmr.msra.gmra.mxu0 %vm224_vm2, %v1903_v48  ;;  %2079 = vmatpush3.bf16.msra.mxu1 %v763_v49  ;;  %v828_v61 = vsel %vm228_vm1, %v823_v55, 0  ;;  %v1954_v55 = vld [vmem:[%s2578_s1 + $0x50] sm:$0xf] }
  0x9e   : > { %2073 = vmatpush3.bf16.msra.mxu0 %v699_v51  ;;  %2074 = vmatprep.mubr.msk.bf16.mxu0 %vm2235_vm0, %v2234_v0  ;;  %v886_v53 = vpop.permute.xlu1 %885 }
  0x9f   : > { %2080 = vmatprep.mubr.msk.bf16.mxu1 %vm2235_vm0, %v2234_v0  ;;  %v884_v54 = vpop.permute.xlu0 %883  ;;  %2084 = vmatprep.subr.bf16.mxu0 %v2234_v0 }
  0xa0   : > { %v887_v56 = vsel %vm822_vm5, %v884_v54, %v886_v53  ;;  %2090 = vmatprep.subr.bf16.mxu1 %v2234_v0  ;;  %v1958_v54 = vld [vmem:[%s2578_s1 + $0x54] sm:$0xf] }
  0xa1   : > { %v892_v59 = vsel %vm228_vm1, %v887_v56, 0 }
  0xa2   : > { %v950_v60 = vpop.permute.xlu1 %949 }
  0xa3   : > { %v948_v62 = vpop.permute.xlu0 %947 }
  0xa4   : > { %2081 = vmatmul.mubr.msk.bf16.vlgmr.msra.gmra.mxu1 %vm224_vm2, %v1914_v57  ;;  %v952_v2 = vsel %vm951_vm6, %v948_v62, %v950_v60 }
  0xa5   : > { %2075 = vmatmul.mubr.msk.bf16.vlgmr.msra.gmra.mxu0 %vm224_vm2, %v1910_v58  ;;  %2091 = vmatpush3.bf16.msra.mxu1 %v892_v59  ;;  %v957_v8 = vsel %vm228_vm1, %v952_v2, 0  ;;  %v1965_v2 = vld [vmem:[%s2578_s1 + $0x5c] sm:$0xf] }
  0xa6   : > { %2085 = vmatpush3.bf16.msra.mxu0 %v828_v61  ;;  %2086 = vmatprep.mubr.msk.bf16.mxu0 %vm2235_vm0, %v2234_v0  ;;  %v1015_v63 = vpop.permute.xlu1 %1014 }
  0xa7   : > { %2092 = vmatprep.mubr.msk.bf16.mxu1 %vm2235_vm0, %v2234_v0  ;;  %v1013_v1 = vpop.permute.xlu0 %1012  ;;  %2096 = vmatprep.subr.bf16.mxu0 %v2234_v0 }
  0xa8   : > { %v1016_v3 = vsel %vm951_vm6, %v1013_v1, %v1015_v63  ;;  %2102 = vmatprep.subr.bf16.mxu1 %v2234_v0 }
  0xa9   : > { %v1021_v6 = vsel %vm228_vm1, %v1016_v3, 0 }
  0xaa   : > { %v1079_v7 = vpop.permute.xlu1 %1078 }
  0xab   : > { %v1077_v9 = vpop.permute.xlu0 %1076 }
  0xac   : > { %2093 = vmatmul.mubr.msk.bf16.vlgmr.msra.gmra.mxu1 %vm224_vm2, %v1921_v4  ;;  %v1081_v12 = vsel %vm1080_vm7, %v1077_v9, %v1079_v7 }
  0xad   : > { %2087 = vmatmul.mubr.msk.bf16.vlgmr.msra.gmra.mxu0 %vm224_vm2, %v1917_v5  ;;  %2103 = vmatpush3.bf16.msra.mxu1 %v1021_v6  ;;  %v1086_v18 = vsel %vm228_vm1, %v1081_v12, 0  ;;  %v1961_v5 = vld [vmem:[%s2578_s1 + $0x58] sm:$0xf] }
  0xae   : > { %2097 = vmatpush3.bf16.msra.mxu0 %v957_v8  ;;  %2098 = vmatprep.mubr.msk.bf16.mxu0 %vm2235_vm0, %v2234_v0  ;;  %v1144_v10 = vpop.permute.xlu1 %1143 }
  0xaf   : > { %2104 = vmatprep.mubr.msk.bf16.mxu1 %vm2235_vm0, %v2234_v0  ;;  %v1142_v11 = vpop.permute.xlu0 %1141  ;;  %2108 = vmatprep.subr.bf16.mxu0 %v2234_v0 }
  0xb0   : > { %v1145_v13 = vsel %vm822_vm5, %v1142_v11, %v1144_v10  ;;  %2114 = vmatprep.subr.bf16.mxu1 %v2234_v0  ;;  %v1968_v10 = vld [vmem:[%s2578_s1 + $0x60] sm:$0xf] }
  0xb1   : > { %v1150_v16 = vsel %vm228_vm1, %v1145_v13, 0 }
  0xb2   : > { %v1208_v17 = vpop.permute.xlu1 %1207 }
  0xb3   : > { %v1206_v19 = vpop.permute.xlu0 %1205 }
  0xb4   : > { %2105 = vmatmul.mubr.msk.bf16.vlgmr.msra.gmra.mxu1 %vm224_vm2, %v1928_v14  ;;  %v1209_v22 = vsel %vm822_vm5, %v1206_v19, %v1208_v17 }
  0xb5   : > { %2099 = vmatmul.mubr.msk.bf16.vlgmr.msra.gmra.mxu0 %vm224_vm2, %v1924_v15  ;;  %2115 = vmatpush3.bf16.msra.mxu1 %v1150_v16  ;;  %v1214_v28 = vsel %vm228_vm1, %v1209_v22, 0 }
  0xb6   : > { %2109 = vmatpush3.bf16.msra.mxu0 %v1086_v18  ;;  %2110 = vmatprep.mubr.msk.bf16.mxu0 %vm2235_vm0, %v2234_v0  ;;  %v1272_v20 = vpop.permute.xlu1 %1271 }
  0xb7   : > { %2116 = vmatprep.mubr.msk.bf16.mxu1 %vm2235_vm0, %v2234_v0  ;;  %v1270_v21 = vpop.permute.xlu0 %1269  ;;  %2120 = vmatprep.subr.bf16.mxu0 %v2234_v0 }
  0xb8   : > { %v1273_v23 = vsel %vm951_vm6, %v1270_v21, %v1272_v20  ;;  %2126 = vmatprep.subr.bf16.mxu1 %v2234_v0 }
  0xb9   : > { %v1278_v26 = vsel %vm228_vm1, %v1273_v23, 0 }
  0xba   : > { %v1336_v27 = vpop.permute.xlu1 %1335 }
  0xbb   : > { %v1334_v29 = vpop.permute.xlu0 %1333 }
  0xbc   : > { %2117 = vmatmul.mubr.msk.bf16.vlgmr.msra.gmra.mxu1 %vm224_vm2, %v1935_v24  ;;  %v1337_v32 = vsel %vm951_vm6, %v1334_v29, %v1336_v27 }
  0xbd   : > { %2111 = vmatmul.mubr.msk.bf16.vlgmr.msra.gmra.mxu0 %vm224_vm2, %v1931_v25  ;;  %2127 = vmatpush3.bf16.msra.mxu1 %v1278_v26  ;;  %v1342_v38 = vsel %vm228_vm1, %v1337_v32, 0 }
  0xbe   : > { %2121 = vmatpush3.bf16.msra.mxu0 %v1214_v28  ;;  %2122 = vmatprep.mubr.msk.bf16.mxu0 %vm2235_vm0, %v2234_v0  ;;  %v1400_v30 = vpop.permute.xlu1 %1399 }
  0xbf   : > { %2128 = vmatprep.mubr.msk.bf16.mxu1 %vm2235_vm0, %v2234_v0  ;;  %v1398_v31 = vpop.permute.xlu0 %1397  ;;  %2132 = vmatprep.subr.bf16.mxu0 %v2234_v0 }
  0xc0   : > { %v1401_v33 = vsel %vm1080_vm7, %v1398_v31, %v1400_v30  ;;  %2138 = vmatprep.subr.bf16.mxu1 %v2234_v0 }
  0xc1   : > { %v1406_v36 = vsel %vm228_vm1, %v1401_v33, 0 }
  0xc2   : > { %v1464_v37 = vpop.permute.xlu1 %1463 }
  0xc3   : > { %v1462_v39 = vpop.permute.xlu0 %1461 }
  0xc4   : > { %2129 = vmatmul.mubr.msk.bf16.vlgmr.msra.gmra.mxu1 %vm224_vm2, %v1943_v34  ;;  %v1466_v42 = vsel %vm1465_vm8, %v1462_v39, %v1464_v37 }
  0xc5   : > { %2123 = vmatmul.mubr.msk.bf16.vlgmr.msra.gmra.mxu0 %vm224_vm2, %v1939_v35  ;;  %2139 = vmatpush3.bf16.msra.mxu1 %v1406_v36  ;;  %v1471_v48 = vsel %vm228_vm1, %v1466_v42, 0 }
  0xc6   : > { %2133 = vmatpush3.bf16.msra.mxu0 %v1342_v38  ;;  %2134 = vmatprep.mubr.msk.bf16.mxu0 %vm2235_vm0, %v2234_v0  ;;  %v1529_v40 = vpop.permute.xlu1 %1528 }
  0xc7   : > { %2140 = vmatprep.mubr.msk.bf16.mxu1 %vm2235_vm0, %v2234_v0  ;;  %v1527_v41 = vpop.permute.xlu0 %1526  ;;  %2144 = vmatprep.subr.bf16.mxu0 %v2234_v0 }
  0xc8   : > { %v1530_v43 = vsel %vm1465_vm8, %v1527_v41, %v1529_v40  ;;  %2150 = vmatprep.subr.bf16.mxu1 %v2234_v0 }
  0xc9   : > { %v1535_v46 = vsel %vm228_vm1, %v1530_v43, 0 }
  0xca   : > { %v1593_v47 = vpop.permute.xlu1 %1592 }
  0xcb   : > { %v1591_v49 = vpop.permute.xlu0 %1590 }
  0xcc   : > { %2141 = vmatmul.mubr.msk.bf16.vlgmr.msra.gmra.mxu1 %vm224_vm2, %v1951_v44  ;;  %v1595_v52 = vsel %vm1594_vm9, %v1591_v49, %v1593_v47 }
  0xcd   : > { %2135 = vmatmul.mubr.msk.bf16.vlgmr.msra.gmra.mxu0 %vm224_vm2, %v1947_v45  ;;  %2151 = vmatpush3.bf16.msra.mxu1 %v1535_v46  ;;  %v1600_v57 = vsel %vm228_vm1, %v1595_v52, 0 }
  0xce   : > { %2145 = vmatpush3.bf16.msra.mxu0 %v1471_v48  ;;  %2146 = vmatprep.mubr.msk.bf16.mxu0 %vm2235_vm0, %v2234_v0  ;;  %v1658_v50 = vpop.permute.xlu1 %1657 }
  0xcf   : > { %2152 = vmatprep.mubr.msk.bf16.mxu1 %vm2235_vm0, %v2234_v0  ;;  %v1656_v51 = vpop.permute.xlu0 %1655  ;;  %2156 = vmatprep.subr.bf16.mxu0 %v2234_v0 }
  0xd0   : > { %v1659_v53 = vsel %vm1594_vm9, %v1656_v51, %v1658_v50  ;;  %2162 = vmatprep.subr.bf16.mxu1 %v2234_v0 }
  0xd1   : > { %v1664_v56 = vsel %vm228_vm1, %v1659_v53, 0 }
  0xd2   : > { %v1722_v58 = vpop.permute.xlu1 %1721 }
  0xd3   : > { %v1720_v59 = vpop.permute.xlu0 %1719 }
  0xd4   : > { %2153 = vmatmul.mubr.msk.bf16.vlgmr.msra.gmra.mxu1 %vm224_vm2, %v1958_v54  ;;  %v1724_v63 = vsel %vm1723_vm10, %v1720_v59, %v1722_v58 }
  0xd5   : > { %2147 = vmatmul.mubr.msk.bf16.vlgmr.msra.gmra.mxu0 %vm224_vm2, %v1954_v55  ;;  %2163 = vmatpush3.bf16.msra.mxu1 %v1664_v56  ;;  %v266_v60 = vpop.f32.mrf.mxu0  ;;  %v1729_v6 = vsel %vm228_vm1, %v1724_v63, 0 }
  0xd6   : > { %2157 = vmatpush3.bf16.msra.mxu0 %v1600_v57  ;;  %2158 = vmatprep.mubr.msk.bf16.mxu0 %vm2235_vm0, %v2234_v0  ;;  %v312_v62 = vpop.f32.mrf.mxu1 }
  0xd7   : > { %2164 = vmatprep.mubr.msk.bf16.mxu1 %vm2235_vm0, %v2234_v0  ;;  %2168 = vmatprep.subr.bf16.mxu0 %v2234_v0  ;;  %v2028_v61 = vpop.f32.mrf.mxu0  ;;  %v313_v1 = vadd.f32 %v312_v62, %v266_v60 }
  0xd8   : > { %v2034_v4 = vpop.f32.mrf.mxu1 }
  0xd9   : > { %v269_v3 = vpop.f32.mrf.mxu0 }
  0xda   : > { %v315_v8 = vpop.f32.mrf.mxu1 }
  0xdb   : > { %v2029_v7 = vpop.f32.mrf.mxu0 }
  0xdc   : > { %2165 = vmatmul.mubr.msk.bf16.vlgmr.msra.gmra.mxu1 %vm224_vm2, %v1965_v2  ;;  %v2035_v9 = vpop.f32.mrf.mxu1 }
  0xdd   : > { %2159 = vmatmul.mubr.msk.bf16.vlgmr.msra.gmra.mxu0 %vm224_vm2, %v1961_v5 }
  0xde   : > { %2169 = vmatpush3.bf16.msra.mxu0 %v1729_v6  ;;  %2170 = vmatprep.mubr.msk.bf16.mxu0 %vm2235_vm0, %v2234_v0 }
  0xe5   : > { %2171 = vmatmul.mubr.msk.bf16.vlgmr.msra.gmra.mxu0 %vm224_vm2, %v1968_v10 }
 0x14c   : > { %v440_v11 = vpop.f32.mrf.mxu1 }
 0x14d   : > { %v376_v12 = vpop.f32.mrf.mxu0 }
 0x14e   : > { %v2046_v13 = vpop.f32.mrf.mxu1  ;;  %v382_v34 = vadd.f32 %v376_v12, %v313_v1 }
 0x14f   : > { %v2040_v14 = vpop.f32.mrf.mxu0 }
 0x150   : > { %v443_v15 = vpop.f32.mrf.mxu1  ;;  %v446_v39 = vadd.f32 %v440_v11, %v382_v34 }
 0x151   : > { %v379_v16 = vpop.f32.mrf.mxu0 }
 0x152   : > { %v2047_v17 = vpop.f32.mrf.mxu1 }
 0x153   : > { %v2041_v18 = vpop.f32.mrf.mxu0 }
 0x154   : > { %v556_v19 = vpop.f32.mrf.mxu1 }
 0x155   : > { %v505_v20 = vpop.f32.mrf.mxu0 }
 0x156   : > { %v2058_v21 = vpop.f32.mrf.mxu1  ;;  %v511_v42 = vadd.f32 %v505_v20, %v446_v39 }
 0x157   : > { %v2052_v22 = vpop.f32.mrf.mxu0 }
 0x158   : > { %v559_v23 = vpop.f32.mrf.mxu1  ;;  %v562_v47 = vadd.f32 %v556_v19, %v511_v42 }
 0x159   : > { %v508_v0 = vpop.f32.mrf.mxu0 }
 0x15a   : > { %v2059_v24 = vpop.f32.mrf.mxu1 }
 0x15b   : > { %v2053_v25 = vpop.f32.mrf.mxu0 }
 0x15c   : > { %v671_v26 = vpop.f32.mrf.mxu1 }
 0x15d   : > { %v607_v27 = vpop.f32.mrf.mxu0 }
 0x15e   : > { %v2070_v28 = vpop.f32.mrf.mxu1  ;;  %v613_v50 = vadd.f32 %v607_v27, %v562_v47 }
 0x15f   : > { %v2064_v29 = vpop.f32.mrf.mxu0 }
 0x160   : > { %v674_v30 = vpop.f32.mrf.mxu1  ;;  %v677_v55 = vadd.f32 %v671_v26, %v613_v50 }
 0x161   : > { %v610_v31 = vpop.f32.mrf.mxu0 }
 0x162   : > { %v2071_v32 = vpop.f32.mrf.mxu1 }
 0x163   : > { %v2065_v33 = vpop.f32.mrf.mxu0 }
 0x164   : > { %v799_v35 = vpop.f32.mrf.mxu1 }
 0x165   : > { %v735_v36 = vpop.f32.mrf.mxu0 }
 0x166   : > { %v2082_v37 = vpop.f32.mrf.mxu1  ;;  %v741_v58 = vadd.f32 %v735_v36, %v677_v55 }
 0x167   : > { %v2076_v38 = vpop.f32.mrf.mxu0 }
 0x168   : > { %v802_v40 = vpop.f32.mrf.mxu1  ;;  %v805_v63 = vadd.f32 %v799_v35, %v741_v58 }
 0x169   : > { %v738_v41 = vpop.f32.mrf.mxu0 }
 0x16a   : > { %v2083_v43 = vpop.f32.mrf.mxu1 }
 0x16b   : > { %v2077_v44 = vpop.f32.mrf.mxu0 }
 0x16c   : > { %v928_v45 = vpop.f32.mrf.mxu1 }
 0x16d   : > { %v864_v46 = vpop.f32.mrf.mxu0 }
 0x16e   : > { %v2094_v48 = vpop.f32.mrf.mxu1  ;;  %v870_v3 = vadd.f32 %v864_v46, %v805_v63 }
 0x16f   : > { %v2088_v49 = vpop.f32.mrf.mxu0 }
 0x170   : > { %v931_v51 = vpop.f32.mrf.mxu1  ;;  %v934_v8 = vadd.f32 %v928_v45, %v870_v3 }
 0x171   : > { %v867_v52 = vpop.f32.mrf.mxu0 }
 0x172   : > { %v2095_v53 = vpop.f32.mrf.mxu1 }
 0x173   : > { %v2089_v54 = vpop.f32.mrf.mxu0 }
 0x174   : > { %v1057_v56 = vpop.f32.mrf.mxu1 }
 0x175   : > { %v993_v57 = vpop.f32.mrf.mxu0 }
 0x176   : > { %v2106_v59 = vpop.f32.mrf.mxu1  ;;  %v999_v11 = vadd.f32 %v993_v57, %v934_v8 }
 0x177   : > { %v2100_v60 = vpop.f32.mrf.mxu0  ;;  %v1783_v59 = vpop.permute.xlu0 %1782 }
 0x178   : > { %v1060_v61 = vpop.f32.mrf.mxu1  ;;  %v1063_v16 = vadd.f32 %v1057_v56, %v999_v11 }
 0x179   : > { %v996_v62 = vpop.f32.mrf.mxu0 }
 0x17a   : > { %v2107_v1 = vpop.f32.mrf.mxu1 }
 0x17b   : > { %v2101_v2 = vpop.f32.mrf.mxu0 }
 0x17c   : > { %v1186_v4 = vpop.f32.mrf.mxu1 }
 0x17d   : > { %v1122_v5 = vpop.f32.mrf.mxu0 }
 0x17e   : > { %v2118_v6 = vpop.f32.mrf.mxu1  ;;  %v1128_v19 = vadd.f32 %v1122_v5, %v1063_v16 }
 0x17f   : > { %v2112_v7 = vpop.f32.mrf.mxu0 }
 0x180   : > { %v1189_v9 = vpop.f32.mrf.mxu1  ;;  %v1192_v0 = vadd.f32 %v1186_v4, %v1128_v19 }
 0x181   : > { %v1125_v10 = vpop.f32.mrf.mxu0 }
 0x182   : > { %v2119_v12 = vpop.f32.mrf.mxu1 }
 0x183   : > { %v2113_v13 = vpop.f32.mrf.mxu0 }
 0x184   : > { %v1314_v14 = vpop.f32.mrf.mxu1 }
 0x185   : > { %v1250_v15 = vpop.f32.mrf.mxu0 }
 0x186   : > { %v2130_v17 = vpop.f32.mrf.mxu1  ;;  %v1256_v26 = vadd.f32 %v1250_v15, %v1192_v0 }
 0x187   : > { %v2124_v18 = vpop.f32.mrf.mxu0 }
 0x188   : > { %v1317_v20 = vpop.f32.mrf.mxu1  ;;  %v1320_v31 = vadd.f32 %v1314_v14, %v1256_v26 }
 0x189   : > { %v1253_v21 = vpop.f32.mrf.mxu0 }
 0x18a   : > { %v2131_v22 = vpop.f32.mrf.mxu1 }
 0x18b   : > { %v2125_v23 = vpop.f32.mrf.mxu0 }
 0x18c   : > { %v1442_v24 = vpop.f32.mrf.mxu1 }
 0x18d   : > { %v1378_v25 = vpop.f32.mrf.mxu0 }
 0x18e   : > { %v2142_v27 = vpop.f32.mrf.mxu1  ;;  %v1384_v34 = vadd.f32 %v1378_v25, %v1320_v31 }
 0x18f   : > { %v2136_v28 = vpop.f32.mrf.mxu0 }
 0x190   : > { %v1445_v29 = vpop.f32.mrf.mxu1  ;;  %v1448_v39 = vadd.f32 %v1442_v24, %v1384_v34 }
 0x191   : > { %v1381_v30 = vpop.f32.mrf.mxu0 }
 0x192   : > { %v2143_v32 = vpop.f32.mrf.mxu1 }
 0x193   : > { %v2137_v33 = vpop.f32.mrf.mxu0 }
 0x194   : > { %v1571_v35 = vpop.f32.mrf.mxu1 }
 0x195   : > { %v1507_v36 = vpop.f32.mrf.mxu0 }
 0x196   : > { %v2154_v37 = vpop.f32.mrf.mxu1  ;;  %v1513_v42 = vadd.f32 %v1507_v36, %v1448_v39 }
 0x197   : > { %v2148_v38 = vpop.f32.mrf.mxu0 }
 0x198   : > { %v1574_v40 = vpop.f32.mrf.mxu1  ;;  %v1577_v47 = vadd.f32 %v1571_v35, %v1513_v42 }
 0x199   : > { %v1510_v41 = vpop.f32.mrf.mxu0 }
 0x19a   : > { %v2155_v43 = vpop.f32.mrf.mxu1 }
 0x19b   : > { %v2149_v44 = vpop.f32.mrf.mxu0 }
 0x19c   : > { %v1700_v45 = vpop.f32.mrf.mxu1 }
 0x19d   : > { %v1636_v46 = vpop.f32.mrf.mxu0 }
 0x19e   : > { %v2166_v48 = vpop.f32.mrf.mxu1  ;;  %v1642_v50 = vadd.f32 %v1636_v46, %v1577_v47 }
 0x19f   : > { %v2160_v49 = vpop.f32.mrf.mxu0 }
 0x1a0   : > { %v1703_v51 = vpop.f32.mrf.mxu1  ;;  %v1706_v55 = vadd.f32 %v1700_v45, %v1642_v50 }
 0x1a1   : > { %v1639_v52 = vpop.f32.mrf.mxu0 }
 0x1a2   : > { %v2167_v53 = vpop.f32.mrf.mxu1 }
 0x1a3   : > { %v2161_v54 = vpop.f32.mrf.mxu0 }
 0x1a5   : > { %v1765_v56 = vpop.f32.mrf.mxu0 }
 0x1a6   : > { %v1771_v57 = vadd.f32 %v1765_v56, %v1706_v55 }
 0x1a7   : > { %v2172_v58 = vpop.f32.mrf.mxu0 }
 0x1a8   : > { %v1785_v61 = vadd.f32 %v1783_v59, %v1771_v57 }
 0x1a9   : > { %v1768_v60 = vpop.f32.mrf.mxu0 }
 0x1aa   : > { %vm1786_vm11 = vcmp.ge.f32.partialorder %v1785_v61, 0.0  ;;  %v1787_v63 = vmul.f32 0.1, %v1785_v61 }
 0x1ab   : > { %v2173_v62 = vpop.f32.mrf.mxu0 }
 0x1ac   : > { %v1788_v1 = vsel %vm1786_vm11, %v1785_v61, %v1787_v63 }
 0x1ad   : > { %1789 = vst [vmem:[%s211_s10] sm:$0xff] %v1788_v1 }
 0x1ae PF: > { %s13_s14 = sadd.s32 1, %s2232_s14   ;;  %s2581_s12 = smov %s2228_s13 }
 0x1af   : > { %p10_p5 = scmp.ge.s32.totalorder %s13_s14, 4   ;;  %s2582_s13 = smov %s2584_s15 }
 0x1b1   :  { %12 = sbr.rel (!%p10_p5) target bundleno = 2 (0x2), region = 100 }

</bundles_post_ra>
